<compile_context>
chip_gen: v7x
topology: tpu7x:2x2x1
jax: 0.10.0
libtpu: 0.0.40
codegen_flags: <defaults>
</compile_context>

<pallas_src>
import functools
import math

import jax
import jax.numpy as jnp
from jax.experimental import pallas as pl
from jax.experimental.pallas import tpu as pltpu

_LANE_CANDIDATES = (512, 384, 256, 128)   # lane-dense widths (multiples of 128)
_DEFAULT_LANE_COLS = 512
_SINGLE_BLOCK_MAX_BYTES = 512 * 1024      # below this: one full-array block
_MIN_BLOCKS = 4                           # pipelining + v7x 2-TC split


def _tpu_generation():
    try:
        kind = jax.devices()[0].device_kind.lower()
    except Exception:
        return 0
    for g in (7, 6, 5, 4, 3):
        if f"v{g}" in kind or f"tpu{g}" in kind:
            return g
    return 0


def _block_budget(gen):
    """(target block bytes, vmem_limit_bytes or None).

    Live VMEM with double-buffered in+out is ~4x the block size.
    """
    if gen >= 7:
        # 24 MiB live: under v7x's 64 MiB physical VMEM, above the 32 MiB
        # default scoped limit -> raise it explicitly.
        return 6 * 1024 * 1024, 40 << 20
    if gen == 6:
        # 16 MiB live fits v6e's 32 MiB default scoped VMEM with headroom.
        return 4 * 1024 * 1024, None
    # v5e / unknown: 8 MiB live fits the 16 MiB default scoped VMEM.
    return 2 * 1024 * 1024, None


def _scale_kernel(scale_ref, x_ref, o_ref, *, compute_dtype):
    # Pure VPU hot path: one vmul per vreg.  The casts are no-ops whenever
    # compute_dtype matches the in/out dtype.
    s = scale_ref[0].astype(compute_dtype)
    o_ref[...] = (x_ref[...].astype(compute_dtype) * s).astype(o_ref.dtype)


def linear_scaling(x, scale=8 ** (-0.5)):
    """Pallas equivalent of LinearScaling.forward: y = x * scale."""
    x = jnp.asarray(x)
    orig_shape = x.shape
    in_dtype = x.dtype
    total = math.prod(orig_shape) if orig_shape else 1
    if total == 0:
        return x  # nothing to scale

    # Output dtype: floats keep their dtype; ints promote to float32 like
    # PyTorch's int-tensor * python-float.
    if jnp.issubdtype(in_dtype, jnp.floating):
        out_dtype = in_dtype
    else:
        out_dtype = jnp.float32

    gen = _tpu_generation()
    if in_dtype == jnp.float32 or out_dtype == jnp.float32:
        compute_dtype = jnp.float32
    elif in_dtype == jnp.bfloat16 and gen >= 6:
        compute_dtype = jnp.bfloat16   # native bf16 VALU on v6e/v7x
    else:
        compute_dtype = jnp.float32    # v5e bf16 / f16 / fp8: compute in f32

    in_itemsize = jnp.dtype(in_dtype).itemsize
    out_itemsize = jnp.dtype(out_dtype).itemsize
    max_itemsize = max(in_itemsize, out_itemsize)
    min_itemsize = min(in_itemsize, out_itemsize)
    # Packed-sublane multiple so bf16/int8 tiles don't pay layout copies.
    sub_mult = 8 * max(1, 4 // min_itemsize)

    # Lane-dense columns: prefer a width that divides `total` exactly so the
    # wrapper never pays a separate pad / slice HBM pass.
    cols = None
    for c in _LANE_CANDIDATES:
        if total % c == 0:
            cols = c
            break

    flat = x.reshape(-1)
    if cols is None:
        # Last resort: pad up to a lane multiple (costs one extra HBM pass).
        cols = _DEFAULT_LANE_COLS
        rows = pl.cdiv(total, cols)
        padded_total = rows * cols
        flat = jnp.pad(flat, (0, padded_total - total))
    else:
        rows = total // cols
        padded_total = total
    x2d = flat.reshape(rows, cols)

    target_block_bytes, vmem_limit = _block_budget(gen)
    total_bytes = total * max_itemsize
    if total_bytes <= _SINGLE_BLOCK_MAX_BYTES:
        # Tiny array: one block whose shape equals the full array (no (8,128)
        # constraint on the row count in that case).
        block_rows = rows
    else:
        target_rows = max(
            sub_mult,
            (target_block_bytes // (cols * max_itemsize)) // sub_mult * sub_mult,
        )
        # Keep >= _MIN_BLOCKS grid steps so DMA/compute pipelining (and the
        # v7x two-TensorCore split) engage even for medium activations.
        cap_rows = max(sub_mult, (pl.cdiv(rows, _MIN_BLOCKS) // sub_mult) * sub_mult)
        block_rows = min(target_rows, cap_rows)
    num_blocks = pl.cdiv(rows, block_rows)   # partial edge block is masked

    cost = pl.CostEstimate(
        flops=total,
        transcendentals=0,
        bytes_accessed=total * (in_itemsize + out_itemsize),
    )

    cp_kwargs = dict(dimension_semantics=("parallel",))
    if vmem_limit is not None:
        cp_kwargs["vmem_limit_bytes"] = vmem_limit

    kernel = functools.partial(_scale_kernel, compute_dtype=compute_dtype)
    scale_arr = jnp.asarray(scale, dtype=jnp.float32).reshape((1,))

    out2d = pl.pallas_call(
        kernel,
        out_shape=jax.ShapeDtypeStruct((rows, cols), out_dtype),
        grid=(num_blocks,),
        in_specs=[
            pl.BlockSpec(memory_space=pltpu.MemorySpace.SMEM),   # scale scalar
            pl.BlockSpec((block_rows, cols), lambda i: (i, 0)),  # x tile
        ],
        out_specs=pl.BlockSpec((block_rows, cols), lambda i: (i, 0)),
        compiler_params=pltpu.CompilerParams(**cp_kwargs),
        cost_estimate=cost,
    )(scale_arr, x2d)

    out_flat = out2d.reshape(-1)
    if padded_total != total:
        out_flat = out_flat[:total]
    return out_flat.reshape(orig_shape)


# TODO(synk): highest-value change remains fusing this scale into the
# producer/consumer kernel (one extra vmul in an otherwise-idle VALU slot);
# this standalone kernel is the fallback.  A pl.Buffered(3) sweep on v7x is
# left out pending hardware measurement.

if __name__ == "__main__":
    key = jax.random.PRNGKey(0)
    scale = 8 ** (-0.5)

    # 1) Small NCHW input consistent with a typical conv-activation usage.
    x = jax.random.normal(key, (2, 4, 16, 16), dtype=jnp.float32)
    y = jax.block_until_ready(linear_scaling(x, scale=scale))
    assert y.shape == x.shape and y.dtype == x.dtype
    assert jnp.allclose(y, x * scale, atol=1e-6, rtol=1e-6)

    # 2) Odd shape that exercises the pad-as-last-resort path.
    k1, k2 = jax.random.split(key)
    x_odd = jax.random.normal(k1, (3, 5, 7, 11), dtype=jnp.float32)
    y_odd = jax.block_until_ready(linear_scaling(x_odd, scale=scale))
    assert jnp.allclose(y_odd, x_odd * scale, atol=1e-6, rtol=1e-6)

    # 3) Larger input: no-pad, multi-block (>=4 grid steps, edge-block) path.
    x_big = jax.random.normal(k2, (1, 16, 512, 160), dtype=jnp.float32)
    y_big = jax.block_until_ready(linear_scaling(x_big, scale=scale))
    assert jnp.allclose(y_big, x_big * scale, atol=1e-6, rtol=1e-6)

    # 4) bf16 input: native bf16 multiply on v6e/v7x, f32 path elsewhere.
    x_bf16 = x.astype(jnp.bfloat16)
    y_bf16 = jax.block_until_ready(linear_scaling(x_bf16, scale=scale))
    ref_bf16 = (x_bf16.astype(jnp.float32) * scale).astype(jnp.bfloat16)
    assert y_bf16.dtype == jnp.bfloat16
    assert jnp.allclose(
        y_bf16.astype(jnp.float32), ref_bf16.astype(jnp.float32),
        atol=2e-2, rtol=2e-2,
    )

    # 5) Integer input promotes to float32 (PyTorch int * float semantics).
    x_int = jax.random.randint(key, (2, 4, 16, 16), -5, 5, dtype=jnp.int32)
    y_int = jax.block_until_ready(linear_scaling(x_int, scale=scale))
    assert y_int.dtype == jnp.float32
    assert jnp.allclose(y_int, x_int.astype(jnp.float32) * scale, atol=1e-6, rtol=1e-6)

    print("KERNEL_OK")
</pallas_src>

<mosaic_0001>
module attributes {stable_mosaic.version = 11 : i64} {
  func.func @_scale_kernel(%arg0: i32, %arg1: memref<1xf32, #tpu.memory_space<smem>>, %arg2: memref<4x512xf32, #tpu.memory_space<vmem>>, %arg3: memref<4x512xf32, #tpu.memory_space<vmem>>) attributes {dimension_semantics = [#tpu.dimension_semantics<parallel>], iteration_bounds = array<i64: 1>, scalar_prefetch = 0 : i64, scratch_operands = 0 : i64, tpu.core_type = #tpu.core_type<tc>, window_params = [{transform_indices = @transform_0, window_bounds = array<i64: 1>}, {transform_indices = @transform_1, window_bounds = array<i64: 4, 512>}, {transform_indices = @transform_2, window_bounds = array<i64: 4, 512>}]} {
    %c0 = arith.constant 0 : index
    %0 = memref.load %arg1[%c0] : memref<1xf32, #tpu.memory_space<smem>>
    %c0_0 = arith.constant 0 : index
    %c0_1 = arith.constant 0 : index
    %1 = vector.load %arg2[%c0_0, %c0_1] : memref<4x512xf32, #tpu.memory_space<vmem>>, vector<4x512xf32>
    %2 = vector.broadcast %0 : f32 to vector<4x512xf32>
    %3 = arith.mulf %1, %2 : vector<4x512xf32>
    %c0_2 = arith.constant 0 : index
    %c0_3 = arith.constant 0 : index
    %4 = vector.load %arg3[%c0_2, %c0_3] : memref<4x512xf32, #tpu.memory_space<vmem>>, vector<4x512xf32>
    tpu.vector_store %arg3[%c0_2, %c0_3], %3 {strides = array<i32>} : memref<4x512xf32, #tpu.memory_space<vmem>>, vector<4x512xf32>,
    return
  }
  func.func @transform_0(%arg0: i32) -> i32 {
    %c0_i32 = arith.constant 0 : i32
    %c0_i32_0 = arith.constant 0 : i32
    return %c0_i32 : i32
  }
  func.func @transform_1(%arg0: i32) -> (i32, i32) {
    %c0_i32 = arith.constant 0 : i32
    %c0_i32_0 = arith.constant 0 : i32
    return %arg0, %c0_i32 : i32, i32
  }
  func.func @transform_2(%arg0: i32) -> (i32, i32) {
    %c0_i32 = arith.constant 0 : i32
    %c0_i32_0 = arith.constant 0 : i32
    return %arg0, %c0_i32 : i32, i32
  }
}

</mosaic_0001>

<bundles_post_ra>
// kernel: tpu_custom_call.1
= control target key start
LH: loop header
LB: loop body
LE: loop exit
PB: predicated region body
PF: predicated region fallthrough
CT: control target
= control target key end

     0   :  { %8 = vsyncpa [#allocation4], 0  ;;  %s142_s0 = inlined_call_operand.<no memory space> [shape: f32[1], index: 0, kind: input, shape index: {}]   ;;  %s143_s1 = inlined_call_operand.hbm [shape: f32[4,512], index: 1, kind: input, shape index: {}]   ;;  %s144_s2 = inlined_call_operand.hbm [shape: f32[4,512], index: 2, kind: output, shape index: {}]  }
   0x1   :  { %9 = vsyncpa [#allocation5], 0  ;;  %s98_s9 = smov [#allocation3]   ;;  %s50_s13 = scalar_lea.hbm %s143_s1, 256 }
   0x2   :  { %s18_s10 = sshll.u32 %s98_s9, 4  ;;  %p51_p0 = scmp.ne.s32.totalorder %s143_s1, %s50_s13  ;;  %s19_s10 = int_to_ptr.vmem [resolvable:$true] %s18_s10 }
   0x3   :  { %p54_p1 = scmp.lt.u32.totalorder %s50_s13, %s143_s1 }
   0x5   :  { %p56_p2 = pnand %p54_p1, %p51_p0 }
   0x7   :  { %59 = shalt.err (!%p56_p2)
}
   0x8   :  { %s60_s18 = scalar_lea.vmem %s19_s10, 256  ;;  %p65_p4 = scmp.lt.s32.totalorder %s19_s10, %s19_s10 }
   0x9   :  { %p61_p3 = scmp.ne.s32.totalorder %s19_s10, %s60_s18  ;;  %p66_p5 = scmp.lt.s32.totalorder %s60_s18, %s60_s18 }
   0xb   :  { %p67_p6 = por %p66_p5, %p65_p4 }
   0xd   :  { %p68_p7 = pnand %p67_p6, %p61_p3 }
   0xf   :  { %71 = shalt.err (!%p68_p7)
}
  0x10   :  { %21 = dma.hbm_to_vmem [thread:$0]  %s143_s1, 256, %s19_s10, [#allocation4]  }
  0x11   :  { %94 = dma.done.wait [#allocation4], 256  }
  0x12   :  { %95 = vsyncadd [#allocation4], 4294967040  ;;  %v28_v0 = vstv %s142_s0  ;;  %s99_s23 = smov [#allocation6]   ;;  %v26_v1 = vld [vmem:[#allocation3] sm:$0xff]  ;;  %v27_v2 = vld [vmem:[#allocation3 + $0x8] sm:$0xff] }
  0x13   :  { %s39_s24 = sshll.u32 %s99_s23, 4  ;;  %v29_v3 = vmul.f32 %v28_v0, %v26_v1  ;;  %v30_v4 = vmul.f32 %v28_v0, %v27_v2  ;;  %s40_s24 = int_to_ptr.vmem [resolvable:$true] %s39_s24 }
  0x14   :  { %s72_s25 = scalar_lea.vmem %s40_s24, 256  ;;  %p77_p9 = scmp.lt.s32.totalorder %s40_s24, %s40_s24 }
  0x15   :  { %31 = vst [vmem:[#allocation6] sm:$0xff] %v29_v3  ;;  %32 = vst [vmem:[#allocation6 + $0x8] sm:$0xff] %v30_v4  ;;  %p73_p8 = scmp.ne.s32.totalorder %s40_s24, %s72_s25  ;;  %p78_p10 = scmp.lt.s32.totalorder %s72_s25, %s72_s25 }
  0x17   :  { %p79_p11 = por %p78_p10, %p77_p9 }
  0x19   :  { %p80_p12 = pnand %p79_p11, %p73_p8 }
  0x1b   :  { %83 = shalt.err (!%p80_p12)
}
  0x1c   :  { %s84_s0 = scalar_lea.hbm %s144_s2, 256 }
  0x1d   :  { %p85_p13 = scmp.ne.s32.totalorder %s144_s2, %s84_s0  ;;  %p88_p0 = scmp.lt.u32.totalorder %s84_s0, %s144_s2 }
  0x1f   :  { %p90_p1 = pnand %p88_p0, %p85_p13 }
  0x21   :  { %93 = shalt.err (!%p90_p1)
}
  0x22   :  { %42 = dma.vmem_to_hbm [thread:$0]  %s40_s24, 256, %s144_s2, [#allocation5]  }
  0x23   :  { %96 = dma.done.wait [#allocation5], 256  }
  0x24   :  { %97 = vsyncadd [#allocation5], 4294967040 }
  0x25   :  { %46 = vsyncpa [#allocation4], 1 }
  0x26   :  { %47 = vsyncpa [#allocation5], 1 }

</bundles_post_ra>
